<compile_context>
chip_gen: v6e
topology: v6e:2x2x1
jax: 0.10.0
libtpu: 0.0.40
codegen_flags: <defaults>
</compile_context>

<pallas_src>
import jax
import jax.numpy as jnp
from jax.experimental import pallas as pl
from jax.experimental.pallas import tpu as pltpu


# --------------------------------------------------------------------------- #
# Kernel
# --------------------------------------------------------------------------- #
def _locked_dropout_kernel(mask_ref, x_ref, o_ref):
    # mask_ref: (1, tc) pre-scaled mask block (same dtype as x).
    # x_ref / o_ref: (tr, tc) tile.  Broadcast over rows, multiply in-dtype.
    o_ref[...] = x_ref[...] * mask_ref[...]


# --------------------------------------------------------------------------- #
# Helpers
# --------------------------------------------------------------------------- #
def make_locked_mask(key, batch, hidden, dropout, dtype):
    """(1, batch*hidden) mask: Bernoulli(1-dropout) / (1-dropout), cast to dtype."""
    keep_prob = 1.0 - dropout
    keep = jax.random.bernoulli(key, p=keep_prob, shape=(1, batch * hidden))
    return (keep.astype(jnp.float32) * (1.0 / keep_prob)).astype(dtype)


def _vmem_capacity_bytes():
    """Per-core VMEM capacity; conservative (v7x) fallback if query fails."""
    try:
        info = pltpu.get_tpu_info()
        cap = int(getattr(info, "vmem_capacity_bytes", 0) or 0)
        if cap > 0:
            return cap
    except Exception:
        pass
    return 64 << 20


def _floor_to(x, m):
    return (x // m) * m


def _lane_fold_factor(T, BH):
    """Smallest k dividing T such that k*BH is a multiple of 128 (else 1)."""
    if BH % 128 == 0:
        return 1
    for k in range(1, T + 1):
        if T % k == 0 and (k * BH) % 128 == 0:
            return k
    return 1


def _choose_tiles(rows, cols, itemsize, vmem_cap):
    """Pick (tr, tc) obeying the (8,128) constraint and a per-block VMEM budget."""
    # ~1/10 of VMEM per block => 2x double-buffered (in + out) blocks stay <~40%.
    block_budget = max(1 << 20, vmem_cap // 10)

    # Column (lane) tile: full width if 8 rows of it fit the budget, else a
    # multiple of 128 (partial trailing column block is padded by Pallas).
    if cols < 128 or 8 * cols * itemsize <= block_budget:
        tc = cols
    else:
        tc = max(128, _floor_to(block_budget // (8 * itemsize), 128))
        tc = min(tc, max(128, _floor_to(cols, 128)))

    # Row (sublane) tile: as many rows as fit, multiple of 8 (or full extent).
    max_rows = max(8, _floor_to(block_budget // (tc * itemsize), 8))
    tr = rows if rows <= max_rows else max_rows

    # Prefer >= 2 grid steps so both v7x TensorCores get work (no-op on 1-TC
    # chips, and skipped for tiny inputs where rows < 16).
    if pl.cdiv(rows, tr) * pl.cdiv(cols, tc) == 1 and rows >= 16:
        tr = max(8, _floor_to(pl.cdiv(rows, 2), 8))

    return tr, tc


# --------------------------------------------------------------------------- #
# Wrapper (LockedDropout.forward)
# --------------------------------------------------------------------------- #
def locked_dropout(inp, key, dropout=0.65, training=True):
    """Pallas implementation of LockedDropout.forward.

    inp: (T, B, H) array (seq_len, batch, hidden).
    key: jax PRNG key for the (1, B, H) mask shared ("locked") across time.
    """
    if not training or dropout == 0.0:
        return inp

    T, B, H = inp.shape
    BH = B * H
    dtype = inp.dtype
    itemsize = jnp.dtype(dtype).itemsize

    # Fold consecutive time steps into the lane axis when B*H alone is not
    # lane-dense so every store is a full-width, unmasked vreg.
    k = _lane_fold_factor(T, BH)
    rows, cols = T // k, k * BH

    mask = make_locked_mask(key, B, H, dropout, dtype)          # (1, BH)
    if k > 1:
        mask = jnp.tile(mask, (1, k))                           # (1, k*BH)
    x2d = inp.reshape(rows, cols)

    vmem_cap = _vmem_capacity_bytes()
    tr, tc = _choose_tiles(rows, cols, itemsize, vmem_cap)
    grid = (pl.cdiv(rows, tr), pl.cdiv(cols, tc))

    block_bytes = tr * tc * itemsize
    # 2x double-buffered in + out blocks + mask block (double-buffered) + headroom,
    # clamped below physical VMEM (matters on v7x's 64 MiB).
    vmem_limit = min(int(vmem_cap * 0.9),
                     4 * block_bytes + 2 * tc * itemsize + (4 << 20))

    out2d = pl.pallas_call(
        _locked_dropout_kernel,
        out_shape=jax.ShapeDtypeStruct((rows, cols), dtype),
        grid_spec=pltpu.PrefetchScalarGridSpec(
            num_scalar_prefetch=0,
            grid=grid,
            in_specs=[
                pl.BlockSpec((1, tc), lambda i, j: (0, j)),    # mask: constant rows
                pl.BlockSpec((tr, tc), lambda i, j: (i, j)),   # input tile
            ],
            out_specs=pl.BlockSpec((tr, tc), lambda i, j: (i, j)),
        ),
        compiler_params=pltpu.CompilerParams(
            dimension_semantics=("parallel", "parallel"),
            vmem_limit_bytes=vmem_limit,
        ),
        cost_estimate=pl.CostEstimate(
            flops=rows * cols,
            transcendentals=0,
            bytes_accessed=(2 * rows * cols + cols) * itemsize,
        ),
    )(mask, x2d)
    return out2d.reshape(T, B, H)


# --------------------------------------------------------------------------- #
# Self-test
# --------------------------------------------------------------------------- #
if __name__ == "__main__":
    key = jax.random.PRNGKey(0)
    x_key, m_key, x2_key, m2_key = jax.random.split(key, 4)

    # --- Small shapes consistent with the LM: (seq_len, batch, hidden) ---
    T, B, H = 8, 2, 32
    dropout = 0.65
    x = jax.random.normal(x_key, (T, B, H), dtype=jnp.float32)

    # Training mode: locked dropout.
    y = jax.block_until_ready(locked_dropout(x, m_key, dropout=dropout, training=True))
    assert y.shape == x.shape and y.dtype == x.dtype

    # Reference: same mask, plain-JAX broadcast multiply.
    mask_ref = make_locked_mask(m_key, B, H, dropout, x.dtype).reshape(1, B, H)
    y_ref = x * mask_ref
    assert bool(jnp.allclose(y, y_ref, rtol=1e-6, atol=1e-6)), "mismatch vs reference"

    # Mask is "locked": dropped (b, h) positions are zero at EVERY timestep.
    dropped = (mask_ref[0] == 0.0)
    assert bool(jnp.all(jnp.where(dropped[None, :, :], y == 0.0, True))), "mask not locked"

    # Eval mode: identity.
    y_eval = jax.block_until_ready(locked_dropout(x, m_key, dropout=dropout, training=False))
    assert bool(jnp.array_equal(y_eval, x))

    # --- Awkward (non-divisible) shape: exercises cdiv grid / padded blocks ---
    T2, B2, H2 = 70, 3, 50          # BH=150: not a multiple of 128, T odd-ish
    d2 = 0.3
    x2 = jax.random.normal(x2_key, (T2, B2, H2), dtype=jnp.float32)
    y2 = jax.block_until_ready(locked_dropout(x2, m2_key, dropout=d2, training=True))
    mask2_ref = make_locked_mask(m2_key, B2, H2, d2, x2.dtype).reshape(1, B2, H2)
    assert bool(jnp.allclose(y2, x2 * mask2_ref, rtol=1e-6, atol=1e-6)), "mismatch (odd shape)"

    print("KERNEL_OK")
</pallas_src>

<mosaic_0001>
module attributes {stable_mosaic.version = 11 : i64} {
  func.func @_locked_dropout_kernel(%arg0: i32, %arg1: i32, %arg2: memref<1x128xf32, #tpu.memory_space<vmem>>, %arg3: memref<4x128xf32, #tpu.memory_space<vmem>>, %arg4: memref<4x128xf32, #tpu.memory_space<vmem>>) attributes {dimension_semantics = [#tpu.dimension_semantics<parallel>, #tpu.dimension_semantics<parallel>], iteration_bounds = array<i64: 1, 1>, scalar_prefetch = 0 : i64, scratch_operands = 0 : i64, tpu.core_type = #tpu.core_type<tc>, window_params = [{transform_indices = @transform_0, window_bounds = array<i64: 1, 128>}, {transform_indices = @transform_1, window_bounds = array<i64: 4, 128>}, {transform_indices = @transform_2, window_bounds = array<i64: 4, 128>}]} {
    %c0 = arith.constant 0 : index
    %c0_0 = arith.constant 0 : index
    %0 = vector.load %arg3[%c0, %c0_0] : memref<4x128xf32, #tpu.memory_space<vmem>>, vector<4x128xf32>
    %c0_1 = arith.constant 0 : index
    %c0_2 = arith.constant 0 : index
    %1 = vector.load %arg2[%c0_1, %c0_2] : memref<1x128xf32, #tpu.memory_space<vmem>>, vector<1x128xf32>
    %2 = vector.broadcast %1 : vector<1x128xf32> to vector<4x128xf32>
    %3 = arith.mulf %0, %2 : vector<4x128xf32>
    %c0_3 = arith.constant 0 : index
    %c0_4 = arith.constant 0 : index
    %4 = vector.load %arg4[%c0_3, %c0_4] : memref<4x128xf32, #tpu.memory_space<vmem>>, vector<4x128xf32>
    tpu.vector_store %arg4[%c0_3, %c0_4], %3 {strides = array<i32>} : memref<4x128xf32, #tpu.memory_space<vmem>>, vector<4x128xf32>,
    return
  }
  func.func @transform_0(%arg0: i32, %arg1: i32) -> (i32, i32) {
    %c0_i32 = arith.constant 0 : i32
    %c0_i32_0 = arith.constant 0 : i32
    return %c0_i32, %arg1 : i32, i32
  }
  func.func @transform_1(%arg0: i32, %arg1: i32) -> (i32, i32) {
    %c0_i32 = arith.constant 0 : i32
    return %arg0, %arg1 : i32, i32
  }
  func.func @transform_2(%arg0: i32, %arg1: i32) -> (i32, i32) {
    %c0_i32 = arith.constant 0 : i32
    return %arg0, %arg1 : i32, i32
  }
}

</mosaic_0001>

<bundles_post_ra>
// kernel: tpu_custom_call.1
= control target key start
LH: loop header
LB: loop body
LE: loop exit
PB: predicated region body
PF: predicated region fallthrough
CT: control target
= control target key end

     0   :  { %7 = vsyncpa [#allocation3], 0  ;;  %s159_s0 = inlined_call_operand.hbm [shape: f32[1,128], index: 0, kind: input, shape index: {}]   ;;  %s160_s1 = inlined_call_operand.hbm [shape: f32[4,128], index: 1, kind: input, shape index: {}]   ;;  %s161_s2 = inlined_call_operand.hbm [shape: f32[4,128], index: 2, kind: output, shape index: {}]  }
   0x1   :  { %8 = vsyncpa [#allocation6], 0 }
   0x2   :  { %9 = vsyncpa [#allocation4], 0  ;;  %s132_s9 = smov [#allocation2]   ;;  %s133_s11 = smov [#allocation5]  }
   0x3   :  { %s16_s10 = sshll.u32 %s132_s9, 4  ;;  %s26_s12 = sshll.u32 %s133_s11, 4  ;;  %s17_s10 = int_to_ptr.vmem [resolvable:$true] %s16_s10  ;;  %s27_s12 = int_to_ptr.vmem [resolvable:$true] %s26_s12 }
   0x4   :  { %s74_s13 = scalar_lea.vmem %s17_s10, 16  ;;  %s78_s14 = scalar_lea.vmem %s17_s10, 32 }
   0x5   :  { %p75_p0 = scmp.ne.s32.totalorder %s17_s10, %s74_s13  ;;  %p79_p1 = scmp.lt.s32.totalorder %s17_s10, %s17_s10 }
   0x6   :  { %p80_p2 = scmp.lt.s32.totalorder %s78_s14, %s74_s13 }
   0x8   :  { %p81_p3 = por %p80_p2, %p79_p1 }
   0xa   :  { %p82_p4 = pnand %p81_p3, %p75_p0 }
   0xc   :  { %85 = shalt.err (!%p82_p4)
}
   0xd   :  { %19 = dma.hbm_to_vmem [thread:$0]  %s159_s0, 16, %s17_s10, [#allocation3]  }
   0xe   :  { %s94_s17 = scalar_lea.vmem %s27_s12, 64  ;;  %p99_p6 = scmp.lt.s32.totalorder %s27_s12, %s27_s12 }
   0xf   :  { %p95_p5 = scmp.ne.s32.totalorder %s27_s12, %s94_s17  ;;  %p100_p7 = scmp.lt.s32.totalorder %s94_s17, %s94_s17 }
  0x11   :  { %p101_p8 = por %p100_p7, %p99_p6 }
  0x13   :  { %p102_p9 = pnand %p101_p8, %p95_p5 }
  0x15   :  { %105 = shalt.err (!%p102_p9)
}
  0x16   :  { %29 = dma.hbm_to_vmem [thread:$0]  %s160_s1, 64, %s27_s12, [#allocation6]  }
  0x17   :  { %126 = dma.done.wait [#allocation3], 16  }
  0x18   :  { %127 = vsyncadd [#allocation3], 4294967280 }
  0x19   :  { %128 = dma.done.wait [#allocation6], 64  }
  0x1a   :  { %129 = vsyncadd [#allocation6], 4294967232  ;;  %s134_s20 = smov [#allocation7]   ;;  %v36_v0 = vld [vmem:[#allocation5] sm:$0xf] }
  0x1b   :  { %s52_s21 = sshll.u32 %s134_s20, 4  ;;  %v62_v1 = vld [vmem:[#allocation2] ss:$0 sm:$0xff]  ;;  %s53_s21 = int_to_ptr.vmem [resolvable:$true] %s52_s21 }
  0x1c   :  { %v44_v2 = vmul.f32 %v62_v1, %v36_v0  ;;  %s106_s0 = scalar_lea.vmem %s53_s21, 64  ;;  %p111_p11 = scmp.lt.s32.totalorder %s53_s21, %s53_s21 }
  0x1d   :  { %p107_p10 = scmp.ne.s32.totalorder %s53_s21, %s106_s0  ;;  %p112_p12 = scmp.lt.s32.totalorder %s106_s0, %s106_s0 }
  0x1e   :  { %45 = vst [vmem:[#allocation7] sm:$0xf] %v44_v2 }
  0x1f   :  { %p113_p13 = por %p112_p12, %p111_p11 }
  0x21   :  { %p114_p0 = pnand %p113_p13, %p107_p10 }
  0x23   :  { %117 = shalt.err (!%p114_p0)
}
  0x24   :  { %55 = dma.vmem_to_hbm [thread:$0]  %s53_s21, 64, %s161_s2, [#allocation4]  }
  0x25   :  { %130 = dma.done.wait [#allocation4], 64  }
  0x26   :  { %131 = vsyncadd [#allocation4], 4294967232 }
  0x27   :  { %59 = vsyncpa [#allocation3], 1 }
  0x28   :  { %60 = vsyncpa [#allocation6], 1 }
  0x29   :  { %61 = vsyncpa [#allocation4], 1 }

</bundles_post_ra>
